<compile_context>
chip_gen: v5e
topology: v5e:2x2
jax: 0.10.0
libtpu: 0.0.40
codegen_flags: <defaults>
</compile_context>

<pallas_src>
import jax
import jax.numpy as jnp
from jax.experimental import pallas as pl
from jax.experimental.pallas import tpu as pltpu

_LANE = 128                 # TPU lane width: slab last dim is exactly 128
_DEFAULT_BLOCK_ROWS = 8192  # (8192, 128) f32 tile = 4 MiB; 2 ops x 2 bufs = 16 MiB scoped
_PALLAS_MIN_BATCH = 4096    # below this, plain XLA is strictly faster


def _scale_bias_kernel(w_ref, b_ref, x_ref, o_ref):
    # w_ref, b_ref: shape-(1,) f32 scalars in SMEM.
    # x_ref, o_ref: (blk, 128) tiles in VMEM.
    # Pure VPU work: broadcast multiply-add, no MXU / result-FIFO involvement.
    w = w_ref[0]
    b = b_ref[0]
    y = x_ref[...].astype(jnp.float32) * w + b   # keep math in f32 (v5e has no bf16 VPU)
    o_ref[...] = y.astype(o_ref.dtype)


def _round_up(n, m):
    return ((n + m - 1) // m) * m


def _sublane_rows(dtype):
    # Native sublane tile height: 8 rows for 4-byte, 16 for 2-byte, 32 for 1-byte dtypes.
    return max(8, 32 // jnp.dtype(dtype).itemsize)


def linear_forward(x, w, b, *, block_rows=_DEFAULT_BLOCK_ROWS, force_pallas=False):
    """torch.nn.Linear(1, 1) forward: x (N, 1), w (1, 1), b (1,) -> (N, 1)."""
    N, K = x.shape
    O = w.shape[0]

    # Dispatch: Pallas only pays off for large N with K = O = 1; otherwise let
    # XLA fuse the trivial scale+bias (or the general matmul) into neighbors.
    if (K != 1 or O != 1) or (N < _PALLAS_MIN_BATCH and not force_pallas):
        return (x @ w.T + b.reshape(1, O)).astype(x.dtype)

    sublane = _sublane_rows(x.dtype)
    itemsize = jnp.dtype(x.dtype).itemsize

    # ---- Lane-dense slab: (rows, 128). ----
    # Zero-copy reshape when N is 128-aligned; otherwise pad only up to the
    # next multiple of 128 (grid masking handles the ragged last row-block).
    rows = pl.cdiv(N, _LANE)
    aligned = (N % _LANE) == 0
    if aligned:
        x_slab = x.reshape(rows, _LANE)
    else:
        x_slab = jnp.pad(x.reshape(-1), (0, rows * _LANE - N)).reshape(rows, _LANE)

    # ---- Tile selection. ----
    # Big tiles amortize the per-grid-step fixed cost; cap so there are >= 2
    # grid steps whenever possible (pipeline overlap, v7x megacore split).
    if rows <= sublane:
        blk = rows                       # block == full dims -> always legal
    else:
        blk = min(block_rows, rows)
        blk = min(blk, _round_up(pl.cdiv(rows, 2), sublane))
        blk = _round_up(blk, sublane)
    grid = (pl.cdiv(rows, blk),)

    # Scoped VMEM: 2 arrays x 2 buffers x tile. Set the limit explicitly so the
    # default 16 MiB scoped limit on v5e doesn't reject 4 MiB tiles.
    tile_bytes = blk * _LANE * itemsize
    vmem_limit = int(max(32 << 20, 4 * tile_bytes + (4 << 20)))

    w1 = w.reshape(1).astype(jnp.float32)
    b1 = b.reshape(1).astype(jnp.float32)

    y_slab = pl.pallas_call(
        _scale_bias_kernel,
        out_shape=jax.ShapeDtypeStruct((rows, _LANE), x.dtype),
        grid=grid,
        in_specs=[
            pl.BlockSpec(memory_space=pltpu.MemorySpace.SMEM),   # w scalar
            pl.BlockSpec(memory_space=pltpu.MemorySpace.SMEM),   # b scalar
            pl.BlockSpec((blk, _LANE), lambda i: (i, 0)),        # x tile
        ],
        out_specs=pl.BlockSpec((blk, _LANE), lambda i: (i, 0)),
        compiler_params=pltpu.CompilerParams(
            # Row tiles are independent -> megacore-shardable on v7x,
            # harmless no-op on v5e/v6e.
            dimension_semantics=("parallel",),
            vmem_limit_bytes=vmem_limit,
        ),
        # Bandwidth-bound custom call: tell XLA's scheduler the true traffic.
        cost_estimate=pl.CostEstimate(
            flops=2 * N, transcendentals=0, bytes_accessed=2 * N * itemsize),
    )(w1, b1, x_slab)

    if aligned:
        return y_slab.reshape(N, 1)          # free view, no extra HBM traffic
    return y_slab.reshape(-1)[:N].reshape(N, 1)


if __name__ == "__main__":
    key = jax.random.PRNGKey(0)
    kx, kw, kb, kx2 = jax.random.split(key, 4)

    # Deterministic parameters, shapes from torch.nn.Linear(1, 1).
    w = jax.random.uniform(kw, (1, 1), dtype=jnp.float32, minval=-1.0, maxval=1.0)
    b = jax.random.uniform(kb, (1,), dtype=jnp.float32, minval=-1.0, maxval=1.0)

    # Small input consistent with Linear(1, 1): batch=8, features=1.
    # force_pallas=True so the kernel path is exercised even at this toy size
    # (the production dispatch would use plain XLA below _PALLAS_MIN_BATCH).
    x = jax.random.normal(kx, (8, 1), dtype=jnp.float32)       # ragged/padded path
    y = linear_forward(x, w, b, force_pallas=True)
    jax.block_until_ready(y)
    y_ref = x @ w.T + b
    assert y.shape == (8, 1)
    assert jnp.allclose(y, y_ref, atol=1e-6, rtol=1e-6), "mismatch vs reference (ragged)"

    x2 = jax.random.normal(kx2, (256, 1), dtype=jnp.float32)   # 128-aligned zero-copy path
    y2 = linear_forward(x2, w, b, force_pallas=True)
    jax.block_until_ready(y2)
    y2_ref = x2 @ w.T + b
    assert y2.shape == (256, 1)
    assert jnp.allclose(y2, y2_ref, atol=1e-6, rtol=1e-6), "mismatch vs reference (aligned)"

    print("KERNEL_OK")
</pallas_src>

<mosaic_0001>
module attributes {stable_mosaic.version = 11 : i64} {
  func.func @_scale_bias_kernel(%arg0: i32, %arg1: memref<1xf32, #tpu.memory_space<smem>>, %arg2: memref<1xf32, #tpu.memory_space<smem>>, %arg3: memref<1x128xf32, #tpu.memory_space<vmem>>, %arg4: memref<1x128xf32, #tpu.memory_space<vmem>>) attributes {dimension_semantics = [#tpu.dimension_semantics<parallel>], iteration_bounds = array<i64: 1>, scalar_prefetch = 0 : i64, scratch_operands = 0 : i64, tpu.core_type = #tpu.core_type<tc>, window_params = [{transform_indices = @transform_0, window_bounds = array<i64: 1>}, {transform_indices = @transform_1, window_bounds = array<i64: 1>}, {transform_indices = @transform_2, window_bounds = array<i64: 1, 128>}, {transform_indices = @transform_3, window_bounds = array<i64: 1, 128>}]} {
    %c0 = arith.constant 0 : index
    %0 = memref.load %arg1[%c0] : memref<1xf32, #tpu.memory_space<smem>>
    %c0_0 = arith.constant 0 : index
    %1 = memref.load %arg2[%c0_0] : memref<1xf32, #tpu.memory_space<smem>>
    %c0_1 = arith.constant 0 : index
    %c0_2 = arith.constant 0 : index
    %2 = vector.load %arg3[%c0_1, %c0_2] : memref<1x128xf32, #tpu.memory_space<vmem>>, vector<1x128xf32>
    %3 = vector.broadcast %0 : f32 to vector<1x128xf32>
    %4 = arith.mulf %2, %3 : vector<1x128xf32>
    %5 = vector.broadcast %1 : f32 to vector<1x128xf32>
    %6 = arith.addf %4, %5 : vector<1x128xf32>
    %c0_3 = arith.constant 0 : index
    %c0_4 = arith.constant 0 : index
    %7 = vector.load %arg4[%c0_3, %c0_4] : memref<1x128xf32, #tpu.memory_space<vmem>>, vector<1x128xf32>
    tpu.vector_store %arg4[%c0_3, %c0_4], %6 {strides = array<i32>} : memref<1x128xf32, #tpu.memory_space<vmem>>, vector<1x128xf32>,
    return
  }
  func.func @transform_0(%arg0: i32) -> i32 {
    %c0_i32 = arith.constant 0 : i32
    %c0_i32_0 = arith.constant 0 : i32
    return %c0_i32 : i32
  }
  func.func @transform_1(%arg0: i32) -> i32 {
    %c0_i32 = arith.constant 0 : i32
    %c0_i32_0 = arith.constant 0 : i32
    return %c0_i32 : i32
  }
  func.func @transform_2(%arg0: i32) -> (i32, i32) {
    %c0_i32 = arith.constant 0 : i32
    %c0_i32_0 = arith.constant 0 : i32
    return %arg0, %c0_i32 : i32, i32
  }
  func.func @transform_3(%arg0: i32) -> (i32, i32) {
    %c0_i32 = arith.constant 0 : i32
    %c0_i32_0 = arith.constant 0 : i32
    return %arg0, %c0_i32 : i32, i32
  }
}

</mosaic_0001>

<bundles_post_ra>
// kernel: tpu_custom_call.1
= control target key start
LH: loop header
LB: loop body
LE: loop exit
PB: predicated region body
PF: predicated region fallthrough
CT: control target
= control target key end

     0   :  { %s101_s0 = inlined_call_operand.<no memory space> [shape: f32[1], index: 0, kind: input, shape index: {}]   ;;  %s102_s1 = inlined_call_operand.<no memory space> [shape: f32[1], index: 1, kind: input, shape index: {}]   ;;  %s103_s2 = inlined_call_operand.vmem [shape: f32[1,128], index: 2, kind: input, shape index: {}]   ;;  %s104_s3 = inlined_call_operand.hbm [shape: f32[1,128], index: 3, kind: output, shape index: {}]  }
   0x1   :  { %v19_v0 = vld [vmem:[%s103_s2] sm:$0x1]  ;;  %v20_v1 = vstv %s101_s0  ;;  %v22_v2 = vstv %s102_s1 }
   0x2   :  { %10 = vsyncpa [#allocation5], 0  ;;  %s32_s20 = sshll.u32 %s104_s3, 4  ;;  %v21_v3 = vmul.f32 %v20_v1, %v19_v0  ;;  %s68_s21 = smov [#allocation4]   ;;  %s33_s20 = int_to_ptr.hbm [resolvable:$true] %s32_s20 }
   0x3   :  { %s30_s22 = sshll.u32 %s68_s21, 4  ;;  %s31_s22 = int_to_ptr.vmem [resolvable:$true] %s30_s22 }
   0x4   :  { %v23_v4 = vadd.f32 %v22_v2, %v21_v3 }
   0x6   :  { %24 = vst [vmem:[#allocation4] sm:$0x1] %v23_v4 }
   0x7   :  { %35 = dma.vmem_to_hbm [thread:$0]  %s31_s22, 16, %s33_s20, [#allocation5]  }
   0x8   :  { %66 = dma.done.wait [#allocation5], 16  }
   0x9   :  { %67 = vsyncadd [#allocation5], 4294967280 }
   0xa   :  { %40 = vsyncpa [#allocation5], 1 }

</bundles_post_ra>
